<compile_context>
chip_gen: v7x
topology: tpu7x:2x2x1
jax: 0.10.0
libtpu: 0.0.40
codegen_flags: <defaults>
</compile_context>

<pallas_src>
import functools

import jax
import jax.numpy as jnp
from jax.experimental import pallas as pl
from jax.experimental.pallas import tpu as pltpu


def _label_smoothing_kernel(pred_ref, tgt_ref, out_ref, *,
                            classes, smoothing, block_b, batch):
    # Logical tile shape is (TB, C); the last dim is the full class extent so
    # Mosaic masks its internal lane padding — no `col < classes` mask needed.
    x = pred_ref[...]
    if x.dtype != jnp.float32:
        x = x.astype(jnp.float32)                          # f32 compute
    tb, c = x.shape
    tgt = tgt_ref[...]                                     # (TB, 1) int32

    # Stable log-softmax statistics.
    m = jnp.max(x, axis=-1, keepdims=True)                 # (TB, 1)
    lse = jnp.log(jnp.sum(jnp.exp(x - m), axis=-1, keepdims=True))

    # Fused weighted reduction.  With w_c = off + (on-off)*[c == tgt] and
    # sum_c w_c == 1 (exact, since off*(C-1) == smoothing), the smoothed CE is
    #   loss_row = -sum_c w_c * (x_c - m - lse) = (m + lse) - sum_c w_c * x_c
    off = jnp.float32(smoothing / (classes - 1))
    on_minus_off = jnp.float32((1.0 - smoothing) - smoothing / (classes - 1))
    col = jax.lax.broadcasted_iota(jnp.int32, (tb, c), 1)
    w = off + on_minus_off * (col == tgt).astype(jnp.float32)
    per_row = (m + lse) - jnp.sum(w * x, axis=-1, keepdims=True)   # (TB, 1)

    # Mask rows beyond the true batch size (ragged last block reads padding).
    row = jax.lax.broadcasted_iota(jnp.int32, (tb, 1), 0)
    valid = (pl.program_id(0) * block_b + row) < batch
    partial = jnp.sum(jnp.where(valid, per_row, 0.0))

    # Lane-dense (1, 8, 128) partial-sum block; wrapper reads [i, 0, 0].
    out_ref[...] = jnp.full((1, 8, 128), partial, dtype=jnp.float32)


def label_smoothing_loss(pred, target, classes, smoothing=0.1, block_b=None):
    """pred: (B, C) float logits, target: (B,) int class ids -> scalar f32."""
    B, C = pred.shape
    assert C == classes, "pred last dim must equal `classes`"
    assert classes > 1, "smoothing/(classes-1) undefined for classes==1"

    itemsize = jnp.dtype(pred.dtype).itemsize
    c_lanes = max(128, ((C + 127) // 128) * 128)   # internal VMEM lane padding

    if block_b is None:
        # VMEM bytes per batch row: double-buffered input tile plus ~4x f32
        # working set (upcast / exp temp / weight / product).  16 MiB budget
        # stays safely inside v5e/v7x scoped-VMEM defaults (raised below).
        bytes_per_row = c_lanes * (2 * itemsize + 4 * 4)
        budget = 16 * 1024 * 1024
        tb = max(8, (budget // bytes_per_row) // 8 * 8)
        if B > 8:
            # Keep >= 2 grid steps so the "parallel" axis lands work on both
            # TensorCores on v7x.
            half = (((B + 1) // 2) + 7) // 8 * 8
            tb = min(tb, half)
        block_b = B if tb >= B else int(tb)
    grid = pl.cdiv(B, block_b)

    tgt2d = target.astype(jnp.int32).reshape(B, 1)

    kernel = functools.partial(
        _label_smoothing_kernel,
        classes=classes, smoothing=float(smoothing), block_b=block_b, batch=B)

    # True footprint (no padded classes): one exp per real element, one log
    # per row, and a single pass over the logits.
    cost = pl.CostEstimate(
        flops=int(4 * B * C),
        transcendentals=int(B * C + B),
        bytes_accessed=int(B * C * itemsize + 4 * B + grid * 8 * 128 * 4),
    )

    # Explicit scoped-VMEM limit with headroom for the f32 temporaries; stays
    # well under v7x's 64 MiB physical VMEM.
    est = block_b * c_lanes * (2 * itemsize + 4 * 4) + (1 << 20)
    vmem_limit = int(min(max(2 * est, 16 << 20), 48 << 20))

    partials = pl.pallas_call(
        kernel,
        out_shape=jax.ShapeDtypeStruct((grid, 8, 128), jnp.float32),
        grid=(grid,),
        in_specs=[
            # Full-extent class dim (no wrapper pad, no extra HBM pass).
            pl.BlockSpec((block_b, C), lambda i: (i, 0)),
            pl.BlockSpec((block_b, 1), lambda i: (i, 0)),
        ],
        out_specs=pl.BlockSpec((1, 8, 128), lambda i: (i, 0, 0)),
        compiler_params=pltpu.CompilerParams(
            dimension_semantics=("parallel",),
            vmem_limit_bytes=vmem_limit),
        cost_estimate=cost,
    )(pred, tgt2d)

    # Tiny final reduction + mean over the *global* batch size.
    return jnp.sum(partials[:, 0, 0]) / jnp.float32(B)


def _reference(pred, target, classes, smoothing=0.1):
    logp = jax.nn.log_softmax(pred.astype(jnp.float32), axis=-1)
    off = smoothing / (classes - 1)
    true_dist = jnp.full_like(logp, off)
    true_dist = true_dist.at[jnp.arange(pred.shape[0]), target].set(1.0 - smoothing)
    return jnp.mean(jnp.sum(-true_dist * logp, axis=-1))


if __name__ == "__main__":
    smoothing = 0.1
    key = jax.random.PRNGKey(0)

    # Case 1: small shapes matching the module (batch=8, classes=16, f32),
    # class dim NOT a multiple of 128 (full-extent last block dim path).
    B, C = 8, 16
    kp, kt, key = jax.random.split(key, 3)
    pred = jax.random.normal(kp, (B, C), dtype=jnp.float32)
    target = jax.random.randint(kt, (B,), 0, C, dtype=jnp.int32)
    loss = label_smoothing_loss(pred, target, classes=C, smoothing=smoothing)
    jax.block_until_ready(loss)
    ref = _reference(pred, target, classes=C, smoothing=smoothing)
    assert jnp.allclose(loss, ref, rtol=1e-4, atol=1e-5), (loss, ref)

    # Case 2: ragged batch (B % block_b != 0), bf16 logits, lane-dense C.
    B2, C2 = 10, 128
    kp2, kt2 = jax.random.split(key)
    pred2 = jax.random.normal(kp2, (B2, C2), dtype=jnp.bfloat16)
    target2 = jax.random.randint(kt2, (B2,), 0, C2, dtype=jnp.int32)
    loss2 = label_smoothing_loss(pred2, target2, classes=C2,
                                 smoothing=smoothing, block_b=8)
    jax.block_until_ready(loss2)
    ref2 = _reference(pred2.astype(jnp.float32), target2, classes=C2,
                      smoothing=smoothing)
    assert jnp.allclose(loss2, ref2, rtol=1e-3, atol=1e-4), (loss2, ref2)

    print("KERNEL_OK")
</pallas_src>

<mosaic_0001>
module attributes {stable_mosaic.version = 11 : i64} {
  func.func @_label_smoothing_kernel(%arg0: i32, %arg1: memref<8x16xf32, #tpu.memory_space<vmem>>, %arg2: memref<8x1xi32, #tpu.memory_space<vmem>>, %arg3: memref<1x8x128xf32, #tpu.memory_space<vmem>>) attributes {dimension_semantics = [#tpu.dimension_semantics<parallel>], iteration_bounds = array<i64: 1>, scalar_prefetch = 0 : i64, scratch_operands = 0 : i64, tpu.core_type = #tpu.core_type<tc>, window_params = [{transform_indices = @transform_0, window_bounds = array<i64: 8, 16>}, {transform_indices = @transform_1, window_bounds = array<i64: 8, 1>}, {transform_indices = @transform_2, window_bounds = array<i64: 1, 8, 128>}]} {
    %c0 = arith.constant 0 : index
    %c0_0 = arith.constant 0 : index
    %0 = vector.load %arg1[%c0, %c0_0] : memref<8x16xf32, #tpu.memory_space<vmem>>, vector<8x16xf32>
    %c0_1 = arith.constant 0 : index
    %c0_2 = arith.constant 0 : index
    %1 = vector.load %arg2[%c0_1, %c0_2] : memref<8x1xi32, #tpu.memory_space<vmem>>, vector<8x1xi32>
    %cst = arith.constant dense<0xFF800000> : vector<8xf32>
    %2 = vector.multi_reduction <maximumf>, %0, %cst [1] : vector<8x16xf32> to vector<8xf32>
    %3 = vector.shape_cast %2 : vector<8xf32> to vector<8x1xf32>
    %4 = vector.broadcast %3 : vector<8x1xf32> to vector<8x16xf32>
    %5 = arith.subf %0, %4 : vector<8x16xf32>
    %6 = math.exp %5 : vector<8x16xf32>
    %cst_3 = arith.constant dense<0.000000e+00> : vector<8xf32>
    %7 = vector.multi_reduction <add>, %6, %cst_3 [1] : vector<8x16xf32> to vector<8xf32>
    %8 = vector.shape_cast %7 : vector<8xf32> to vector<8x1xf32>
    %9 = math.log %8 : vector<8x1xf32>
    %10 = tpu.iota {dimensions = array<i32: 1>} : vector<8x16xi32>
    %11 = vector.broadcast %1 : vector<8x1xi32> to vector<8x16xi32>
    %12 = arith.cmpi eq, %10, %11 : vector<8x16xi32>
    %13 = arith.extui %12 : vector<8x16xi1> to vector<8x16xi32>
    %14 = arith.sitofp %13 : vector<8x16xi32> to vector<8x16xf32>
    %cst_4 = arith.constant 0.893333315 : f32
    %15 = vector.broadcast %cst_4 : f32 to vector<8x16xf32>
    %16 = arith.mulf %15, %14 : vector<8x16xf32>
    %cst_5 = arith.constant 0.00666666683 : f32
    %17 = vector.broadcast %cst_5 : f32 to vector<8x16xf32>
    %18 = arith.addf %17, %16 : vector<8x16xf32>
    %19 = arith.addf %3, %9 : vector<8x1xf32>
    %20 = arith.mulf %18, %0 : vector<8x16xf32>
    %cst_6 = arith.constant dense<0.000000e+00> : vector<8xf32>
    %21 = vector.multi_reduction <add>, %20, %cst_6 [1] : vector<8x16xf32> to vector<8xf32>
    %22 = vector.shape_cast %21 : vector<8xf32> to vector<8x1xf32>
    %23 = arith.subf %19, %22 : vector<8x1xf32>
    %24 = tpu.iota {dimensions = array<i32: 0>} : vector<8x1xi32>
    %c8_i32 = arith.constant 8 : i32
    %25 = arith.muli %arg0, %c8_i32 : i32
    %26 = vector.broadcast %25 : i32 to vector<8x1xi32>
    %27 = arith.addi %26, %24 : vector<8x1xi32>
    %c8_i32_7 = arith.constant 8 : i32
    %28 = vector.broadcast %c8_i32_7 : i32 to vector<8x1xi32>
    %29 = arith.cmpi slt, %27, %28 : vector<8x1xi32>
    %cst_8 = arith.constant 0.000000e+00 : f32
    %30 = vector.broadcast %cst_8 : f32 to vector<8x1xf32>
    %31 = arith.select %29, %23, %30 : vector<8x1xi1>, vector<8x1xf32>
    %32 = vector.shape_cast %31 : vector<8x1xf32> to vector<1x8x1xf32>
    %cst_9 = arith.constant dense<0.000000e+00> : vector<1xf32>
    %33 = vector.multi_reduction <add>, %32, %cst_9 [1, 2] : vector<1x8x1xf32> to vector<1xf32>
    %34 = vector.shape_cast %33 : vector<1xf32> to vector<1x1x1xf32>
    %35 = vector.extract %34[0, 0, 0] : f32 from vector<1x1x1xf32>
    %36 = vector.broadcast %35 : f32 to vector<1x8x128xf32>
    %c0_10 = arith.constant 0 : index
    %c0_11 = arith.constant 0 : index
    %c0_12 = arith.constant 0 : index
    %37 = vector.load %arg3[%c0_10, %c0_11, %c0_12] : memref<1x8x128xf32, #tpu.memory_space<vmem>>, vector<1x8x128xf32>
    tpu.vector_store %arg3[%c0_10, %c0_11, %c0_12], %36 {strides = array<i32>} : memref<1x8x128xf32, #tpu.memory_space<vmem>>, vector<1x8x128xf32>,
    return
  }
  func.func @transform_0(%arg0: i32) -> (i32, i32) {
    %c0_i32 = arith.constant 0 : i32
    %c0_i32_0 = arith.constant 0 : i32
    return %arg0, %c0_i32 : i32, i32
  }
  func.func @transform_1(%arg0: i32) -> (i32, i32) {
    %c0_i32 = arith.constant 0 : i32
    %c0_i32_0 = arith.constant 0 : i32
    return %arg0, %c0_i32 : i32, i32
  }
  func.func @transform_2(%arg0: i32) -> (i32, i32, i32) {
    %c0_i32 = arith.constant 0 : i32
    %c0_i32_0 = arith.constant 0 : i32
    %c0_i32_1 = arith.constant 0 : i32
    return %arg0, %c0_i32, %c0_i32_0 : i32, i32, i32
  }
}

</mosaic_0001>

<bundles_post_ra>
// kernel: tpu_custom_call.1
= control target key start
LH: loop header
LB: loop body
LE: loop exit
PB: predicated region body
PF: predicated region fallthrough
CT: control target
= control target key end

     0   :  { %vm14_vm0 = vcmask 130048   ;;  %s150_s0 = inlined_call_operand.vmem [shape: f32[8,16], index: 0, kind: input, shape index: {}]   ;;  %s151_s1 = inlined_call_operand.vmem [shape: s32[8,1], index: 1, kind: input, shape index: {}]   ;;  %s152_s2 = inlined_call_operand.hbm [shape: f32[1,8,128], index: 2, kind: output, shape index: {}]  }
   0x1   :  { %v12_v0 = vld [vmem:[%s150_s0] sm:$0xff] }
   0x2   :  { %7 = vsyncpa [#allocation3], 0  ;;  %v15_v1 = vsel %vm14_vm0, %v12_v0, -inf  ;;  %v111_v2 = vmov 0   ;;  %v13_v3 = vld [vmem:[%s151_s1] sm:$0xff]  ;;  %v26_v6 = vlaneseq  ;;  %v112_v10 = vmov 0.0  }
   0x3   :  { %82 = vset.pattern.permute.xlu0 %v111_v2  ;;  %vm49_vm2 = vcmask 7168   ;;  %s113_s0 = smov [#allocation2]  }
   0x4   :  { %16 = vmax.xlane.f32.xlu0 %v15_v1  ;;  %v27_v8 = vand.u32 127, %v26_v6  ;;  %s68_s1 = sshll.u32 %s113_s0, 4  ;;  %s69_s1 = int_to_ptr.vmem [resolvable:$true] %s68_s1 }
   0x5   :  { %s87_s14 = scalar_lea.vmem %s69_s1, 128  ;;  %p92_p1 = scmp.lt.s32.totalorder %s69_s1, %s69_s1 }
   0x6   :  { %p88_p0 = scmp.ne.s32.totalorder %s69_s1, %s87_s14  ;;  %p93_p2 = scmp.lt.s32.totalorder %s87_s14, %s87_s14 }
   0x8   :  { %p94_p3 = por %p93_p2, %p92_p1 }
   0xa   :  { %p95_p4 = pnand %p94_p3, %p88_p0 }
  0x1a   :  { %29 = vperm.xlu0 %82, %v13_v3  }
  0x91   :  { %v17_v4 = vpop.xlane.xlu0 %16 }
  0x92   :  { %v18_v5 = vsub.f32 %v12_v0, %v17_v4 }
  0x94   :  { %v19_v7 = vmul.f32 1.442695, %v18_v5 }
  0x96   :  { %83 = vpow2.f32 %v19_v7 }
  0x99   :  { %v30_v9 = vpop.permute.xlu0 %29 }
  0x9a   :  { %vm31_vm1 = vcmp.eq.s32.totalorder %v27_v8, %v30_v9 }
  0x9b   :  { %v76_v11 = vsel %vm31_vm1, 1.0, %v112_v10 }
  0x9c   :  { %v34_v12 = vmul.f32 0.8933333, %v76_v11 }
  0x9e   :  { %v35_v13 = vadd.f32 0.006666667, %v34_v12 }
  0xa0   :  { %v84_v14 = vpop.eup %83  ;;  %v37_v15 = vmul.f32 %v35_v13, %v12_v0 }
  0xa1   :  { %v21_v16 = vsel %vm14_vm0, %v84_v14, 0.0 }
  0xa2   :  { %22 = vadd.xlane.f32.xlu1 %v21_v16  ;;  %v38_v17 = vsel %vm14_vm0, %v37_v15, 0.0 }
  0xa6   :  { %39 = vadd.xlane.f32.xlu1 %v38_v17 }
 0x12f   :  { %v23_v18 = vpop.xlane.xlu1 %22 }
 0x130   :  { %85 = vlog2.f32 %v23_v18 }
 0x133   :  { %v40_v21 = vpop.xlane.xlu1 %39 }
 0x13a   :  { %v86_v19 = vpop.eup %85 }
 0x13b   :  { %v25_v20 = vmul.f32 0.6931472, %v86_v19 }
 0x13d   :  { %v36_v22 = vadd.f32 %v25_v20, %v17_v4 }
 0x13f   :  { %v41_v23 = vsub.f32 %v36_v22, %v40_v21 }
 0x141   :  { %v50_v24 = vsel %vm49_vm2, %v41_v23, 0.0 }
 0x142   :  { %51 = vadd.xlane.f32.xlu1 %v50_v24 }
 0x1cf   :  { %v52_v25 = vpop.xlane.xlu1 %51 }
 0x1d0   :  { %v53_v26 = vrot.slane %v52_v25, 4 }
 0x1d2   :  { %v54_v27 = vadd.f32 %v53_v26, %v52_v25 }
 0x1d4   :  { %v55_v28 = vrot.slane %v54_v27, 2 }
 0x1d6   :  { %v56_v29 = vadd.f32 %v55_v28, %v54_v27 }
 0x1d8   :  { %v57_v30 = vrot.slane %v56_v29, 1 }
 0x1da   :  { %v58_v31 = vadd.f32 %v57_v30, %v56_v29 }
 0x1dc   :  { %77 = vpush %v58_v31 }
 0x20d   :  { %s78_s13 = spop %77 }
 0x20e   :  { %v60_v32 = vstv %s78_s13 }
 0x20f   :  { %61 = vst [vmem:[#allocation2] sm:$0xff] %v60_v32 }
 0x210   :  { %98 = shalt.err (!%p95_p4)
}
 0x211   :  { %s99_s17 = scalar_lea.hbm %s152_s2, 128 }
 0x212   :  { %p100_p5 = scmp.ne.s32.totalorder %s152_s2, %s99_s17  ;;  %p103_p6 = scmp.lt.u32.totalorder %s99_s17, %s152_s2 }
 0x214   :  { %p105_p7 = pnand %p103_p6, %p100_p5 }
 0x216   :  { %108 = shalt.err (!%p105_p7)
}
 0x217   :  { %71 = dma.vmem_to_hbm [thread:$0]  %s69_s1, 128, %s152_s2, [#allocation3]  }
 0x218   :  { %109 = dma.done.wait [#allocation3], 128  }
 0x219   :  { %110 = vsyncadd [#allocation3], 4294967168 }
 0x21a   :  { %75 = vsyncpa [#allocation3], 1 }

</bundles_post_ra>
